<compile_context>
chip_gen: v5e
topology: v5e:2x2
jax: 0.10.0
libtpu: 0.0.40
codegen_flags: <defaults>
</compile_context>

<pallas_src>
import functools

import jax
import jax.numpy as jnp
from jax.experimental import pallas as pl
from jax.experimental.pallas import tpu as pltpu


# ---------------------------------------------------------------------------
# Kernels
# ---------------------------------------------------------------------------

def _adain_kernel(x_ref, w_ref, b_ref, o_ref, *, eps):
    """One (TC, HW) block: per-row two-pass instance-norm stats + affine."""
    x = x_ref[...].astype(jnp.float32)                          # (TC, HW)
    mean = jnp.mean(x, axis=-1, keepdims=True)                  # (TC, 1)
    centered = x - mean
    var = jnp.mean(centered * centered, axis=-1, keepdims=True)  # biased
    inv_std = jax.lax.rsqrt(var + eps)                          # EUP slot
    gamma = w_ref[...]                                          # (TC, 1) f32
    beta = b_ref[...]                                           # (TC, 1) f32
    # out = (x - mean) * (inv_std * gamma) + beta  -- reuse `centered`; no
    # second full-tile temporary beyond the f32 upcast.
    o_ref[...] = (centered * (inv_std * gamma) + beta).astype(o_ref.dtype)


def _adain_stats_kernel(x_ref, sum_ref, sq_ref, *, hw, hw_t):
    """Accumulate per-row sum / sum-of-squares across HW blocks (masked tail)."""
    j = pl.program_id(1)

    @pl.when(j == 0)
    def _():
        sum_ref[...] = jnp.zeros_like(sum_ref)
        sq_ref[...] = jnp.zeros_like(sq_ref)

    x = x_ref[...].astype(jnp.float32)                          # (TR, HW_T)
    col = j * hw_t + jax.lax.broadcasted_iota(jnp.int32, x.shape, 1)
    xm = jnp.where(col < hw, x, 0.0)
    sum_ref[...] += jnp.sum(xm, axis=-1, keepdims=True)
    sq_ref[...] += jnp.sum(xm * xm, axis=-1, keepdims=True)


def _adain_apply_kernel(x_ref, scale_ref, shift_ref, o_ref):
    """Elementwise y = x * scale + shift with per-row scale/shift."""
    x = x_ref[...].astype(jnp.float32)
    o_ref[...] = (x * scale_ref[...] + shift_ref[...]).astype(o_ref.dtype)


# ---------------------------------------------------------------------------
# Sizing helpers
# ---------------------------------------------------------------------------

def _sublane_multiple(dtype):
    isz = jnp.dtype(dtype).itemsize
    return {4: 8, 2: 16, 1: 32}.get(isz, 8)


def _vmem_capacity_bytes():
    try:
        info = pltpu.get_tpu_info()
        for attr in ("vmem_capacity_bytes", "vmem_size_bytes", "vmem_bytes"):
            v = getattr(info, attr, None)
            if v:
                return int(v)
    except Exception:
        pass
    return 64 * 1024 * 1024  # conservative (v7x-like) fallback


# ---------------------------------------------------------------------------
# Wrapper
# ---------------------------------------------------------------------------

def adaptive_instance_norm_2d(x, weight, bias, eps=1e-5, block_rows=None):
    """x: (B, C, H, W); weight/bias: (B*C,).  Returns (B, C, H, W)."""
    b, c, h, w = x.shape
    n = b * c
    hw = h * w
    assert weight.shape == (n,) and bias.shape == (n,)

    itemsize = jnp.dtype(x.dtype).itemsize
    mult = _sublane_multiple(x.dtype)
    eps = float(eps)

    # Contiguous (free) reshape to a lane-dense (B*C, H*W) view.
    x2 = x.reshape(n, hw)
    w2 = weight.reshape(n, 1).astype(jnp.float32)
    b2 = bias.reshape(n, 1).astype(jnp.float32)

    # --- generation-aware VMEM / tile budget --------------------------------
    capacity = _vmem_capacity_bytes()
    if capacity <= 64 * 1024 * 1024:        # v7x-class: 64 MiB physical
        target_block_bytes = 2 << 20
        vmem_cap = 40 << 20
    else:                                   # v5e / v6e: 128 MiB physical
        target_block_bytes = 8 << 20
        vmem_cap = 100 << 20
    headroom = 2 << 20

    # Per-row VMEM cost for the single-pass kernel:
    #   2x double-buffered input + 2x output (x.dtype) + ~2 f32 full-tile temps
    bytes_per_row = hw * (4 * itemsize + 2 * 4)
    tc_from_vmem = ((vmem_cap - headroom) // max(bytes_per_row, 1)) // mult * mult
    tc_from_target = max(mult, (target_block_bytes // (hw * itemsize)) // mult * mult)

    use_fallback = (block_rows is None) and (tc_from_vmem < mult)

    if not use_fallback:
        # ----------------------- main path: (tc, HW) blocks -----------------
        if block_rows is not None:
            tc = max(mult, block_rows - block_rows % mult)
        else:
            tc = min(tc_from_target, max(mult, tc_from_vmem))

        n_ceil = pl.cdiv(n, mult) * mult
        tc = max(mult, min(tc, n_ceil))

        # Make sure a multi-TC chip gets >= 2 grid steps when blocks stay big.
        if pl.cdiv(n, tc) < 2:
            tc_half = (n // 2) // mult * mult
            if tc_half >= mult and tc_half * hw * itemsize >= (1 << 20):
                tc = tc_half

        vmem_need = (4 * tc * hw * itemsize   # double-buffered in + out
                     + 2 * tc * hw * 4        # in-kernel f32 temporaries
                     + 8 * tc * 4             # gamma/beta blocks
                     + headroom)
        vmem_limit = int(min(vmem_cap, max(32 << 20, vmem_need)))

        kernel = functools.partial(_adain_kernel, eps=eps)

        out2 = pl.pallas_call(
            kernel,
            out_shape=jax.ShapeDtypeStruct((n, hw), x.dtype),
            grid=(pl.cdiv(n, tc),),           # no explicit pad: Pallas handles
            in_specs=[                        # the boundary block (OOB writes
                pl.BlockSpec((tc, hw), lambda i: (i, 0)),   # are dropped).
                pl.BlockSpec((tc, 1), lambda i: (i, 0)),
                pl.BlockSpec((tc, 1), lambda i: (i, 0)),
            ],
            out_specs=pl.BlockSpec((tc, hw), lambda i: (i, 0)),
            compiler_params=pltpu.CompilerParams(
                dimension_semantics=("parallel",),
                vmem_limit_bytes=vmem_limit,
            ),
        )(x2, w2, b2)
        return out2.reshape(b, c, h, w)

    # --------------------- large-HW fallback: HW-tiled ----------------------
    # Even a (mult, HW) block + temps does not fit the VMEM budget.  Run a
    # masked sum/sumsq stats kernel over HW tiles, fold into per-row
    # scale/shift (tiny (n,1) JAX ops), then an elementwise apply kernel.
    tr = mult
    row_bytes_per_col = tr * (4 * itemsize + 2 * 4)
    hw_t = max(128, ((vmem_cap - headroom) // row_bytes_per_col) // 128 * 128)
    hw_t = min(hw_t, pl.cdiv(hw, 128) * 128)

    io_bytes = tr * hw_t * itemsize
    vmem_need = 4 * io_bytes + 2 * tr * hw_t * 4 + headroom
    vmem_limit = int(min(vmem_cap, max(32 << 20, vmem_need)))
    params = pltpu.CompilerParams(
        dimension_semantics=("parallel", "arbitrary"),
        vmem_limit_bytes=vmem_limit,
    )

    grid = (pl.cdiv(n, tr), pl.cdiv(hw, hw_t))
    stats_kernel = functools.partial(_adain_stats_kernel, hw=hw, hw_t=hw_t)
    sums, sqs = pl.pallas_call(
        stats_kernel,
        out_shape=(jax.ShapeDtypeStruct((n, 1), jnp.float32),
                   jax.ShapeDtypeStruct((n, 1), jnp.float32)),
        grid=grid,
        in_specs=[pl.BlockSpec((tr, hw_t), lambda i, j: (i, j))],
        out_specs=(pl.BlockSpec((tr, 1), lambda i, j: (i, 0)),
                   pl.BlockSpec((tr, 1), lambda i, j: (i, 0))),
        compiler_params=params,
    )(x2)

    # Single-pass variance (f32-accumulated); clamp against cancellation.
    mean = sums / hw
    var = jnp.maximum(sqs / hw - mean * mean, 0.0)
    inv_std = jax.lax.rsqrt(var + eps)
    scale = inv_std * w2                        # (n, 1)
    shift = b2 - mean * scale                   # (n, 1)

    apply_params = pltpu.CompilerParams(
        dimension_semantics=("parallel", "parallel"),
        vmem_limit_bytes=vmem_limit,
    )
    out2 = pl.pallas_call(
        _adain_apply_kernel,
        out_shape=jax.ShapeDtypeStruct((n, hw), x.dtype),
        grid=grid,
        in_specs=[
            pl.BlockSpec((tr, hw_t), lambda i, j: (i, j)),
            pl.BlockSpec((tr, 1), lambda i, j: (i, 0)),
            pl.BlockSpec((tr, 1), lambda i, j: (i, 0)),
        ],
        out_specs=pl.BlockSpec((tr, hw_t), lambda i, j: (i, j)),
        compiler_params=apply_params,
    )(x2, scale, shift)
    return out2.reshape(b, c, h, w)


# ---------------------------------------------------------------------------
# Reference + test
# ---------------------------------------------------------------------------

def _reference(x, weight, bias, eps=1e-5):
    """Pure-JAX reference mirroring F.batch_norm on the (1, B*C, H, W) view."""
    b, c, h, w = x.shape
    xf = x.astype(jnp.float32)
    mean = xf.mean(axis=(2, 3), keepdims=True)
    var = ((xf - mean) ** 2).mean(axis=(2, 3), keepdims=True)  # biased
    gamma = weight.reshape(b, c, 1, 1)
    beta = bias.reshape(b, c, 1, 1)
    return ((xf - mean) / jnp.sqrt(var + eps) * gamma + beta).astype(x.dtype)


if __name__ == "__main__":
    key = jax.random.PRNGKey(0)

    # Primary small-shape check (matches the module's expected usage).
    B, C, H, W = 2, 4, 16, 16
    kx, kw, kb, kx2, kw2, kb2 = jax.random.split(key, 6)

    x = jax.random.normal(kx, (B, C, H, W), dtype=jnp.float32)
    # The module requires weight/bias (length B*C) assigned before use.
    weight = 1.0 + 0.1 * jax.random.normal(kw, (B * C,), dtype=jnp.float32)
    bias = 0.1 * jax.random.normal(kb, (B * C,), dtype=jnp.float32)

    out = adaptive_instance_norm_2d(x, weight, bias, eps=1e-5)
    out = jax.block_until_ready(out)
    ref = _reference(x, weight, bias, eps=1e-5)
    assert out.shape == (B, C, H, W)
    assert jnp.allclose(out, ref, atol=1e-4, rtol=1e-4), "mismatch vs reference"

    # Second check exercising the unpadded boundary block (n % tc != 0).
    B2, C2, H2, W2 = 3, 5, 16, 16   # n = 15, tc = 8 -> partial tail block
    x_t = jax.random.normal(kx2, (B2, C2, H2, W2), dtype=jnp.float32)
    w_t = 1.0 + 0.1 * jax.random.normal(kw2, (B2 * C2,), dtype=jnp.float32)
    b_t = 0.1 * jax.random.normal(kb2, (B2 * C2,), dtype=jnp.float32)
    out_t = jax.block_until_ready(
        adaptive_instance_norm_2d(x_t, w_t, b_t, eps=1e-5, block_rows=8))
    ref_t = _reference(x_t, w_t, b_t, eps=1e-5)
    assert jnp.allclose(out_t, ref_t, atol=1e-4, rtol=1e-4), "tail-block mismatch"

    print("KERNEL_OK")
</pallas_src>

<mosaic_0001>
module attributes {stable_mosaic.version = 11 : i64} {
  func.func @_adain_kernel(%arg0: i32, %arg1: memref<8x256xf32, #tpu.memory_space<vmem>>, %arg2: memref<8x1xf32, #tpu.memory_space<vmem>>, %arg3: memref<8x1xf32, #tpu.memory_space<vmem>>, %arg4: memref<8x256xf32, #tpu.memory_space<vmem>>) attributes {dimension_semantics = [#tpu.dimension_semantics<parallel>], iteration_bounds = array<i64: 1>, scalar_prefetch = 0 : i64, scratch_operands = 0 : i64, tpu.core_type = #tpu.core_type<tc>, window_params = [{transform_indices = @transform_0, window_bounds = array<i64: 8, 256>}, {transform_indices = @transform_1, window_bounds = array<i64: 8, 1>}, {transform_indices = @transform_2, window_bounds = array<i64: 8, 1>}, {transform_indices = @transform_3, window_bounds = array<i64: 8, 256>}]} {
    %c0 = arith.constant 0 : index
    %c0_0 = arith.constant 0 : index
    %0 = vector.load %arg1[%c0, %c0_0] : memref<8x256xf32, #tpu.memory_space<vmem>>, vector<8x256xf32>
    %cst = arith.constant dense<0.000000e+00> : vector<8xf32>
    %1 = vector.multi_reduction <add>, %0, %cst [1] : vector<8x256xf32> to vector<8xf32>
    %2 = vector.shape_cast %1 : vector<8xf32> to vector<8x1xf32>
    %cst_1 = arith.constant 2.560000e+02 : f32
    %3 = vector.broadcast %cst_1 : f32 to vector<8x1xf32>
    %4 = arith.divf %2, %3 : vector<8x1xf32>
    %5 = vector.broadcast %4 : vector<8x1xf32> to vector<8x256xf32>
    %6 = arith.subf %0, %5 : vector<8x256xf32>
    %7 = arith.mulf %6, %6 : vector<8x256xf32>
    %cst_2 = arith.constant dense<0.000000e+00> : vector<8xf32>
    %8 = vector.multi_reduction <add>, %7, %cst_2 [1] : vector<8x256xf32> to vector<8xf32>
    %9 = vector.shape_cast %8 : vector<8xf32> to vector<8x1xf32>
    %cst_3 = arith.constant 2.560000e+02 : f32
    %10 = vector.broadcast %cst_3 : f32 to vector<8x1xf32>
    %11 = arith.divf %9, %10 : vector<8x1xf32>
    %cst_4 = arith.constant 9.99999974E-6 : f32
    %12 = vector.broadcast %cst_4 : f32 to vector<8x1xf32>
    %13 = arith.addf %11, %12 : vector<8x1xf32>
    %14 = math.rsqrt %13 : vector<8x1xf32>
    %c0_5 = arith.constant 0 : index
    %c0_6 = arith.constant 0 : index
    %15 = vector.load %arg2[%c0_5, %c0_6] : memref<8x1xf32, #tpu.memory_space<vmem>>, vector<8x1xf32>
    %c0_7 = arith.constant 0 : index
    %c0_8 = arith.constant 0 : index
    %16 = vector.load %arg3[%c0_7, %c0_8] : memref<8x1xf32, #tpu.memory_space<vmem>>, vector<8x1xf32>
    %17 = arith.mulf %14, %15 : vector<8x1xf32>
    %18 = vector.broadcast %17 : vector<8x1xf32> to vector<8x256xf32>
    %19 = arith.mulf %6, %18 : vector<8x256xf32>
    %20 = vector.broadcast %16 : vector<8x1xf32> to vector<8x256xf32>
    %21 = arith.addf %19, %20 : vector<8x256xf32>
    %c0_9 = arith.constant 0 : index
    %c0_10 = arith.constant 0 : index
    %22 = vector.load %arg4[%c0_9, %c0_10] : memref<8x256xf32, #tpu.memory_space<vmem>>, vector<8x256xf32>
    tpu.vector_store %arg4[%c0_9, %c0_10], %21 {strides = array<i32>} : memref<8x256xf32, #tpu.memory_space<vmem>>, vector<8x256xf32>,
    return
  }
  func.func @transform_0(%arg0: i32) -> (i32, i32) {
    %c0_i32 = arith.constant 0 : i32
    %c0_i32_0 = arith.constant 0 : i32
    return %arg0, %c0_i32 : i32, i32
  }
  func.func @transform_1(%arg0: i32) -> (i32, i32) {
    %c0_i32 = arith.constant 0 : i32
    %c0_i32_0 = arith.constant 0 : i32
    return %arg0, %c0_i32 : i32, i32
  }
  func.func @transform_2(%arg0: i32) -> (i32, i32) {
    %c0_i32 = arith.constant 0 : i32
    %c0_i32_0 = arith.constant 0 : i32
    return %arg0, %c0_i32 : i32, i32
  }
  func.func @transform_3(%arg0: i32) -> (i32, i32) {
    %c0_i32 = arith.constant 0 : i32
    %c0_i32_0 = arith.constant 0 : i32
    return %arg0, %c0_i32 : i32, i32
  }
}

</mosaic_0001>

<bundles_post_ra>
// kernel: tpu_custom_call.1
= control target key start
LH: loop header
LB: loop body
LE: loop exit
PB: predicated region body
PF: predicated region fallthrough
CT: control target
= control target key end

     0   :  { %s155_s0 = inlined_call_operand.vmem [shape: f32[8,256], index: 0, kind: input, shape index: {}]   ;;  %s156_s1 = inlined_call_operand.vmem [shape: f32[8,1], index: 1, kind: input, shape index: {}]   ;;  %s157_s2 = inlined_call_operand.vmem [shape: f32[8,1], index: 2, kind: input, shape index: {}]   ;;  %s158_s3 = inlined_call_operand.hbm [shape: f32[8,256], index: 3, kind: output, shape index: {}]  }
   0x1   :  { %v15_v0 = vld [vmem:[%s155_s0] sm:$0xff]  ;;  %v16_v1 = vld [vmem:[%s155_s0 + $0x8] sm:$0xff] }
   0x2   :  { %8 = vsyncpa [#allocation3], 0  ;;  %v17_v2 = vadd.f32 %v16_v1, %v15_v0  ;;  %v117_v3 = vmov 256.0   ;;  %v118_v17 = vmov 0   ;;  %v47_v27 = vld [vmem:[%s156_s1] sm:$0xff]  ;;  %s119_s19 = smov [#allocation2]  }
   0x3   :  { %87 = vrcp.f32 %v117_v3  ;;  %85 = vset.pattern.permute.xlu1 %v118_v17  ;;  %86 = vset.pattern.permute.xlu0 %v118_v17  ;;  %v48_v30 = vld [vmem:[%s157_s2] sm:$0xff]  ;;  %s71_s20 = sshll.u32 %s119_s19, 4  ;;  %s73_s23 = sshll.u32 %s158_s3, 4  ;;  %s72_s20 = int_to_ptr.vmem [resolvable:$true] %s71_s20  ;;  %s74_s23 = int_to_ptr.hbm [resolvable:$true] %s73_s23 }
   0x4   :  { %18 = vadd.xlane.f32.xlu0 %v17_v2 }
   0x9   :  { %v88_v4 = vpop.eup %87 }
   0xa   :  { %v21_v5 = vmul.f32 256.0, %v88_v4  ;;  %vm25_vm0 = vweird.f32 %v88_v4 }
   0xc   :  { %v22_v6 = vsub.f32 1.0, %v21_v5 }
   0xe   :  { %v23_v7 = vmul.f32 %v88_v4, %v22_v6 }
  0x10   :  { %v24_v8 = vadd.f32 %v88_v4, %v23_v7 }
  0x12   :  { %v26_v9 = vsel %vm25_vm0, %v88_v4, %v24_v8 }
  0x77   :  { %v19_v10 = vpop.xlane.xlu0 %18 }
  0x78   :  { %v27_v11 = vmul.f32 %v26_v9, %v19_v10 }
  0x7a   :  { %v28_v12 = vsub.f32 %v15_v0, %v27_v11  ;;  %v29_v13 = vsub.f32 %v16_v1, %v27_v11 }
  0x7c   :  { %v30_v14 = vmul.f32 %v28_v12, %v28_v12  ;;  %v31_v15 = vmul.f32 %v29_v13, %v29_v13 }
  0x7e   :  { %v32_v16 = vadd.f32 %v31_v15, %v30_v14 }
  0x80   :  { %33 = vadd.xlane.f32.xlu0 %v32_v16 }
  0xf3   :  { %v34_v18 = vpop.xlane.xlu0 %33 }
  0xf4   :  { %v35_v19 = vmul.f32 %v34_v18, %v26_v9 }
  0xf6   :  { %v36_v20 = vadd.f32 1e-05, %v35_v19 }
  0xf8   :  { %89 = vrsqrt.f32 %v36_v20  ;;  %vm43_vm2 = vweird.f32 %v36_v20 }
  0xfe   :  { %v90_v21 = vpop.eup %89 }
  0xff   :  { %v38_v22 = vmul.f32 %v90_v21, %v36_v20  ;;  %vm44_vm1 = vweird.f32 %v90_v21 }
 0x100   :  { %vm45_vm3 = vmor %vm43_vm2, %vm44_vm1 }
 0x101   :  { %v39_v23 = vmul.f32 %v90_v21, %v38_v22 }
 0x103   :  { %v40_v24 = vmul.f32 0.5, %v39_v23 }
 0x105   :  { %v41_v25 = vsub.f32 1.5, %v40_v24 }
 0x107   :  { %v42_v26 = vmul.f32 %v90_v21, %v41_v25 }
 0x109   :  { %v46_v28 = vsel %vm45_vm3, %v90_v21, %v42_v26 }
 0x10a   :  { %v49_v29 = vmul.f32 %v47_v27, %v46_v28 }
 0x10c   :  { %52 = vperm.xlu1 %85, %v49_v29  }
 0x114   :  { %59 = vperm.xlu1 %85, %v48_v30  }
 0x17e   :  { %v53_v31 = vpop.permute.xlu1 %52 }
 0x17f   :  { %v55_v32 = vmul.f32 %v53_v31, %v28_v12  ;;  %v56_v33 = vmul.f32 %v53_v31, %v29_v13 }
 0x186   :  { %v60_v34 = vpop.permute.xlu1 %59 }
 0x187   :  { %v62_v35 = vadd.f32 %v60_v34, %v55_v32  ;;  %v63_v36 = vadd.f32 %v60_v34, %v56_v33 }
 0x189   :  { %64 = vst [vmem:[#allocation2] sm:$0xff] %v62_v35 }
 0x18a   :  { %65 = vst [vmem:[#allocation2 + $0x8] sm:$0xff] %v63_v36 }
 0x18b   :  { %76 = dma.vmem_to_hbm [thread:$0]  %s72_s20, 256, %s74_s23, [#allocation3]  }
 0x18c   :  { %115 = dma.done.wait [#allocation3], 256  }
 0x18d   :  { %116 = vsyncadd [#allocation3], 4294967040 }
 0x18e   :  { %81 = vsyncpa [#allocation3], 1 }

</bundles_post_ra>
